<compile_context>
chip_gen: v7x
topology: tpu7x:2x2x1
jax: 0.10.0
libtpu: 0.0.40
codegen_flags: <defaults>
</compile_context>

<pallas_src>
import functools

import jax
import jax.numpy as jnp
from jax.experimental import pallas as pl
from jax.experimental.pallas import tpu as pltpu

ACT_DTYPE = jnp.bfloat16
LN_EPS = 1e-5

# Desired tile sizes (v6e-class defaults; shrink for v7x's 64 MiB VMEM, keep 128-aligned
# for v5e).  They automatically snap down / degenerate to full dims for small shapes.
TM, TN, TK, TI = 256, 512, 512, 512
VMEM_LIMIT = 32 * 1024 * 1024


def _tile(dim, desired, align):
    """Largest `align`-multiple <= desired that evenly divides dim; else the full dim."""
    if dim <= desired:
        return dim
    t = (desired // align) * align
    while t >= align:
        if dim % t == 0:
            return t
        t -= align
    return dim


# ----------------------------- Pallas kernels ------------------------------ #

def _linear_kernel(x_ref, w_ref, b_ref, o_ref, acc_ref, *, activation):
    """Tiled y = x @ wT + b with optional fused activation (wT pre-transposed)."""
    @pl.when(pl.program_id(2) == 0)
    def _():
        acc_ref[...] = jnp.zeros_like(acc_ref)

    acc_ref[...] += jnp.dot(x_ref[...], w_ref[...],
                            preferred_element_type=jnp.float32)

    @pl.when(pl.program_id(2) == pl.num_programs(2) - 1)
    def _():
        y = acc_ref[...] + b_ref[...].astype(jnp.float32)
        if activation == "gelu":
            # TODO(synk): HF RoBERTa uses exact (erf) GELU; tanh approximation used here.
            y = jax.nn.gelu(y)
        elif activation == "tanh":
            y = jnp.tanh(y)
        o_ref[...] = y.astype(o_ref.dtype)


def linear(x, w_t, b, activation=None, out_dtype=None):
    """y = x @ w_t + b   (w_t is the PyTorch weight already transposed to (in, out))."""
    M, K = x.shape
    _, N = w_t.shape
    tm = _tile(M, TM, 8)
    tn = _tile(N, TN, 128)
    tk = _tile(K, TK, 128)
    kern = functools.partial(_linear_kernel, activation=activation)
    return pl.pallas_call(
        kern,
        out_shape=jax.ShapeDtypeStruct((M, N), out_dtype or x.dtype),
        grid=(M // tm, N // tn, K // tk),
        in_specs=[pl.BlockSpec((tm, tk), lambda i, j, k: (i, k)),
                  pl.BlockSpec((tk, tn), lambda i, j, k: (k, j)),
                  pl.BlockSpec((1, tn), lambda i, j, k: (0, j))],
        out_specs=pl.BlockSpec((tm, tn), lambda i, j, k: (i, j)),
        scratch_shapes=[pltpu.VMEM((tm, tn), jnp.float32)],
        compiler_params=pltpu.CompilerParams(
            dimension_semantics=("parallel", "parallel", "arbitrary"),
            vmem_limit_bytes=VMEM_LIMIT),
    )(x, w_t, b.reshape(1, N))


def _linear_res_ln_kernel(x_ref, w_ref, b_ref, r_ref, g_ref, bt_ref, o_ref, acc_ref,
                          *, eps):
    """Tiled y = LayerNorm(x @ wT + b + residual); LN fused into the matmul epilogue."""
    @pl.when(pl.program_id(1) == 0)
    def _():
        acc_ref[...] = jnp.zeros_like(acc_ref)

    acc_ref[...] += jnp.dot(x_ref[...], w_ref[...],
                            preferred_element_type=jnp.float32)

    @pl.when(pl.program_id(1) == pl.num_programs(1) - 1)
    def _():
        y = (acc_ref[...] + b_ref[...].astype(jnp.float32)
             + r_ref[...].astype(jnp.float32))
        mu = jnp.mean(y, axis=-1, keepdims=True)
        var = jnp.mean(jnp.square(y - mu), axis=-1, keepdims=True)
        yn = (y - mu) * jax.lax.rsqrt(var + eps)
        o_ref[...] = (yn * g_ref[...] + bt_ref[...]).astype(o_ref.dtype)


def linear_residual_ln(x, w_t, b, residual, gamma, beta, eps=LN_EPS):
    M, K = x.shape
    _, N = w_t.shape           # N == hidden (LN needs the full row -> no N tiling)
    tm = _tile(M, TM, 8)
    tk = _tile(K, TK, 128)
    kern = functools.partial(_linear_res_ln_kernel, eps=eps)
    return pl.pallas_call(
        kern,
        out_shape=jax.ShapeDtypeStruct((M, N), residual.dtype),
        grid=(M // tm, K // tk),
        in_specs=[pl.BlockSpec((tm, tk), lambda i, k: (i, k)),
                  pl.BlockSpec((tk, N), lambda i, k: (k, 0)),
                  pl.BlockSpec((1, N), lambda i, k: (0, 0)),
                  pl.BlockSpec((tm, N), lambda i, k: (i, 0)),
                  pl.BlockSpec((1, N), lambda i, k: (0, 0)),
                  pl.BlockSpec((1, N), lambda i, k: (0, 0))],
        out_specs=pl.BlockSpec((tm, N), lambda i, k: (i, 0)),
        scratch_shapes=[pltpu.VMEM((tm, N), jnp.float32)],
        compiler_params=pltpu.CompilerParams(
            dimension_semantics=("parallel", "arbitrary"),
            vmem_limit_bytes=VMEM_LIMIT),
    )(x, w_t, b.reshape(1, N), residual, gamma.reshape(1, N), beta.reshape(1, N))


def _ffn_kernel(x_ref, wi_ref, bi_ref, wd_ref, bd_ref, g_ref, bt_ref, o_ref, acc_ref,
                *, eps):
    """Fused FFN: per I-tile GELU(x@WiT+bi) @ WdT accumulate, epilogue = +bd +x, LN.
    Never materializes the (M, I) intermediate in HBM. Residual is the kernel input x."""
    @pl.when(pl.program_id(1) == 0)
    def _():
        acc_ref[...] = jnp.zeros_like(acc_ref)

    h = jnp.dot(x_ref[...], wi_ref[...], preferred_element_type=jnp.float32)
    h = h + bi_ref[...].astype(jnp.float32)
    # TODO(synk): HF RoBERTa uses exact (erf) GELU; tanh approximation used here.
    h = jax.nn.gelu(h)
    acc_ref[...] += jnp.dot(h.astype(x_ref.dtype), wd_ref[...],
                            preferred_element_type=jnp.float32)

    @pl.when(pl.program_id(1) == pl.num_programs(1) - 1)
    def _():
        y = (acc_ref[...] + bd_ref[...].astype(jnp.float32)
             + x_ref[...].astype(jnp.float32))            # residual == FFN input rows
        mu = jnp.mean(y, axis=-1, keepdims=True)
        var = jnp.mean(jnp.square(y - mu), axis=-1, keepdims=True)
        yn = (y - mu) * jax.lax.rsqrt(var + eps)
        o_ref[...] = (yn * g_ref[...] + bt_ref[...]).astype(o_ref.dtype)


def ffn_fused(x, wi_t, bi, wd_t, bd, gamma, beta, eps=LN_EPS):
    M, H = x.shape
    _, I = wi_t.shape
    tm = _tile(M, TM, 8)
    ti = _tile(I, TI, 128)
    kern = functools.partial(_ffn_kernel, eps=eps)
    return pl.pallas_call(
        kern,
        out_shape=jax.ShapeDtypeStruct((M, H), x.dtype),
        grid=(M // tm, I // ti),
        in_specs=[pl.BlockSpec((tm, H), lambda i, j: (i, 0)),
                  pl.BlockSpec((H, ti), lambda i, j: (0, j)),
                  pl.BlockSpec((1, ti), lambda i, j: (0, j)),
                  pl.BlockSpec((ti, H), lambda i, j: (j, 0)),
                  pl.BlockSpec((1, H), lambda i, j: (0, 0)),
                  pl.BlockSpec((1, H), lambda i, j: (0, 0)),
                  pl.BlockSpec((1, H), lambda i, j: (0, 0))],
        out_specs=pl.BlockSpec((tm, H), lambda i, j: (i, 0)),
        scratch_shapes=[pltpu.VMEM((tm, H), jnp.float32)],
        compiler_params=pltpu.CompilerParams(
            dimension_semantics=("parallel", "arbitrary"),
            vmem_limit_bytes=VMEM_LIMIT),
    )(x, wi_t, bi.reshape(1, I), wd_t, bd.reshape(1, H),
      gamma.reshape(1, H), beta.reshape(1, H))


def _ln_kernel(x_ref, g_ref, b_ref, o_ref, *, eps):
    """Plain LayerNorm (no residual) — used once after the embeddings."""
    x = x_ref[...].astype(jnp.float32)
    mu = jnp.mean(x, axis=-1, keepdims=True)
    var = jnp.mean(jnp.square(x - mu), axis=-1, keepdims=True)
    y = (x - mu) * jax.lax.rsqrt(var + eps)
    o_ref[...] = (y * g_ref[...] + b_ref[...]).astype(o_ref.dtype)


def layernorm(x, gamma, beta, eps=LN_EPS):
    M, H = x.shape
    tm = _tile(M, TM, 8)
    kern = functools.partial(_ln_kernel, eps=eps)
    return pl.pallas_call(
        kern,
        out_shape=jax.ShapeDtypeStruct((M, H), x.dtype),
        grid=(M // tm,),
        in_specs=[pl.BlockSpec((tm, H), lambda i: (i, 0)),
                  pl.BlockSpec((1, H), lambda i: (0, 0)),
                  pl.BlockSpec((1, H), lambda i: (0, 0))],
        out_specs=pl.BlockSpec((tm, H), lambda i: (i, 0)),
        compiler_params=pltpu.CompilerParams(
            dimension_semantics=("parallel",), vmem_limit_bytes=VMEM_LIMIT),
    )(x, gamma.reshape(1, H), beta.reshape(1, H))


def _attn_kernel(q_ref, k_ref, v_ref, m_ref, o_ref, *, scale):
    """All heads of one batch element per grid step; f32 softmax, bf16 MXU matmuls."""
    q = q_ref[0]                                          # (nH, S, Dh) bf16
    k = k_ref[0]
    v = v_ref[0]
    s = jnp.einsum("hqd,hkd->hqk", q, k,
                   preferred_element_type=jnp.float32) * scale
    s = s + m_ref[...]                                    # (1,1,S) additive mask bias
    s = s - jnp.max(s, axis=-1, keepdims=True)
    p = jnp.exp(s)
    denom = jnp.sum(p, axis=-1, keepdims=True)
    p = p * pl.reciprocal(denom, approx=True)             # EUP reciprocal, not VALU div
    ctx = jnp.einsum("hqk,hkd->hqd", p.astype(v.dtype), v,
                     preferred_element_type=jnp.float32)
    o_ref[0] = ctx.astype(o_ref.dtype)


def attention(q, k, v, mask_bias, head_dim):
    """q/k/v: (B, nH, S, Dh); mask_bias: (B, 1, S) f32 additive bias."""
    B, nH, S, Dh = q.shape
    kern = functools.partial(_attn_kernel, scale=1.0 / float(head_dim) ** 0.5)
    qkv_spec = pl.BlockSpec((1, nH, S, Dh), lambda b: (b, 0, 0, 0))
    return pl.pallas_call(
        kern,
        out_shape=jax.ShapeDtypeStruct((B, nH, S, Dh), q.dtype),
        grid=(B,),
        in_specs=[qkv_spec, qkv_spec, qkv_spec,
                  pl.BlockSpec((1, 1, S), lambda b: (b, 0, 0))],
        out_specs=pl.BlockSpec((1, nH, S, Dh), lambda b: (b, 0, 0, 0)),
        compiler_params=pltpu.CompilerParams(
            dimension_semantics=("parallel",), vmem_limit_bytes=VMEM_LIMIT),
    )(q, k, v, mask_bias)


# ------------------------------- parameters -------------------------------- #

def init_params(key, cfg):
    H, I = cfg["hidden"], cfg["inter"]
    keys = iter(jax.random.split(key, 64))

    def dense_t(k, in_dim, out_dim):
        # weights pre-transposed to (in, out) and stored in bf16 -> no w.T in-kernel
        w = (0.02 * jax.random.normal(k, (in_dim, out_dim), jnp.float32)).astype(ACT_DTYPE)
        return w, jnp.zeros((out_dim,), jnp.float32)

    p = {
        "word_emb": (0.02 * jax.random.normal(next(keys), (cfg["vocab"], H),
                                              jnp.float32)).astype(ACT_DTYPE),
        "pos_emb": (0.02 * jax.random.normal(next(keys), (cfg["seq"] + 2, H),
                                             jnp.float32)).astype(ACT_DTYPE),
        "type_emb": (0.02 * jax.random.normal(next(keys), (1, H),
                                              jnp.float32)).astype(ACT_DTYPE),
        "emb_ln_g": jnp.ones((H,), jnp.float32),
        "emb_ln_b": jnp.zeros((H,), jnp.float32),
        "layers": [],
    }
    for _ in range(cfg["layers"]):
        lp = {}
        wq, bq = dense_t(next(keys), H, H)
        wk, bk = dense_t(next(keys), H, H)
        wv, bv = dense_t(next(keys), H, H)
        lp["qkv_w"] = jnp.concatenate([wq, wk, wv], axis=1)      # (H, 3H) fused QKV
        lp["qkv_b"] = jnp.concatenate([bq, bk, bv])              # (3H,)
        lp["o_w"], lp["o_b"] = dense_t(next(keys), H, H)
        lp["ln1_g"], lp["ln1_b"] = jnp.ones((H,), jnp.float32), jnp.zeros((H,), jnp.float32)
        lp["i_w"], lp["i_b"] = dense_t(next(keys), H, I)
        lp["d_w"], lp["d_b"] = dense_t(next(keys), I, H)
        lp["ln2_g"], lp["ln2_b"] = jnp.ones((H,), jnp.float32), jnp.zeros((H,), jnp.float32)
        p["layers"].append(lp)
    p["pool_w"], p["pool_b"] = dense_t(next(keys), H, H)
    p["cls_w"], p["cls_b"] = dense_t(next(keys), H, cfg["num_intents"])
    return p


# -------------------------------- forward ---------------------------------- #

def bert_classifier_forward(params, input_ids, mask, cfg):
    B, S = input_ids.shape
    H, nH = cfg["hidden"], cfg["heads"]
    Dh = H // nH
    M = B * S

    # ---- embeddings (plain-JAX gathers); RoBERTa positions with padding_idx=1
    pad_idx = 1
    positions = (jnp.cumsum(mask, axis=1) * mask).astype(jnp.int32) + pad_idx
    word = jnp.take(params["word_emb"], input_ids, axis=0)
    pos = jnp.take(params["pos_emb"], positions, axis=0)
    emb = (word + pos + params["type_emb"][0]).reshape(M, H).astype(ACT_DTYPE)
    x = layernorm(emb, params["emb_ln_g"], params["emb_ln_b"])   # no dummy residual

    # ---- additive attention-mask bias (B, 1, S), f32
    mask_bias = ((1.0 - mask.astype(jnp.float32)) * -1e9).reshape(B, 1, S)

    # ---- transformer encoder layers
    for lp in params["layers"]:
        # fused Q/K/V projection: one pass over x producing (M, 3H)
        qkv = linear(x, lp["qkv_w"], lp["qkv_b"])
        # head split (layout glue): (M,3H) -> (3, B, nH, S, Dh)
        qkv = qkv.reshape(B, S, 3, nH, Dh).transpose(2, 0, 3, 1, 4)
        ctx = attention(qkv[0], qkv[1], qkv[2], mask_bias, Dh)   # (B, nH, S, Dh)
        ctx = ctx.transpose(0, 2, 1, 3).reshape(M, H)            # merge heads (glue)
        # attention output projection + residual + LayerNorm, fused epilogue
        x = linear_residual_ln(ctx, lp["o_w"], lp["o_b"], x, lp["ln1_g"], lp["ln1_b"])
        # fused FFN: up-proj + GELU + down-proj + residual + LayerNorm in one kernel
        x = ffn_fused(x, lp["i_w"], lp["i_b"], lp["d_w"], lp["d_b"],
                      lp["ln2_g"], lp["ln2_b"])

    # ---- pooler: tanh(W @ h[:, 0] + b)  == "pooled_output"
    cls_tok = x.reshape(B, S, H)[:, 0, :]
    pooled = linear(cls_tok, params["pool_w"], params["pool_b"], activation="tanh")

    # ---- dropout (eval-mode identity) + classification head
    # TODO(synk): train-mode stochastic dropout (pltpu.prng_*) not implemented.
    logits = linear(pooled, params["cls_w"], params["cls_b"], out_dtype=jnp.float32)
    return logits


# ---------------------------------- main ------------------------------------ #

if __name__ == "__main__":
    cfg = dict(vocab=100, hidden=32, heads=4, layers=2, inter=64, seq=8, num_intents=4)

    root = jax.random.PRNGKey(0)
    k_params, k_ids = jax.random.split(root)
    params = init_params(k_params, cfg)

    B, S = 2, cfg["seq"]
    input_ids = jax.random.randint(k_ids, (B, S), 2, cfg["vocab"], dtype=jnp.int32)
    mask = jnp.ones((B, S), dtype=jnp.int32)

    logits = bert_classifier_forward(params, input_ids, mask, cfg)
    jax.block_until_ready(logits)
    assert logits.shape == (B, cfg["num_intents"])
    print("KERNEL_OK")
</pallas_src>

<mosaic_0001>
module attributes {stable_mosaic.version = 11 : i64} {
  func.func @_ln_kernel(%arg0: i32, %arg1: memref<16x32xbf16, #tpu.memory_space<vmem>>, %arg2: memref<1x32xf32, #tpu.memory_space<vmem>>, %arg3: memref<1x32xf32, #tpu.memory_space<vmem>>, %arg4: memref<16x32xbf16, #tpu.memory_space<vmem>>) attributes {dimension_semantics = [#tpu.dimension_semantics<parallel>], iteration_bounds = array<i64: 1>, scalar_prefetch = 0 : i64, scratch_operands = 0 : i64, tpu.core_type = #tpu.core_type<tc>, window_params = [{transform_indices = @transform_0, window_bounds = array<i64: 16, 32>}, {pipeline_mode = #tpu.pipeline_mode<synchronous>, transform_indices = @transform_1, window_bounds = array<i64: 1, 32>}, {pipeline_mode = #tpu.pipeline_mode<synchronous>, transform_indices = @transform_2, window_bounds = array<i64: 1, 32>}, {transform_indices = @transform_3, window_bounds = array<i64: 16, 32>}]} {
    %c0 = arith.constant 0 : index
    %c0_0 = arith.constant 0 : index
    %0 = vector.load %arg1[%c0, %c0_0] : memref<16x32xbf16, #tpu.memory_space<vmem>>, vector<16x32xbf16>
    %1 = arith.extf %0 : vector<16x32xbf16> to vector<16x32xf32>
    %cst = arith.constant dense<0.000000e+00> : vector<16xf32>
    %2 = vector.multi_reduction <add>, %1, %cst [1] : vector<16x32xf32> to vector<16xf32>
    %3 = vector.shape_cast %2 : vector<16xf32> to vector<16x1xf32>
    %cst_1 = arith.constant 3.200000e+01 : f32
    %4 = vector.broadcast %cst_1 : f32 to vector<16x1xf32>
    %5 = arith.divf %3, %4 : vector<16x1xf32>
    %6 = vector.broadcast %5 : vector<16x1xf32> to vector<16x32xf32>
    %7 = arith.subf %1, %6 : vector<16x32xf32>
    %8 = arith.mulf %7, %7 : vector<16x32xf32>
    %cst_2 = arith.constant dense<0.000000e+00> : vector<16xf32>
    %9 = vector.multi_reduction <add>, %8, %cst_2 [1] : vector<16x32xf32> to vector<16xf32>
    %10 = vector.shape_cast %9 : vector<16xf32> to vector<16x1xf32>
    %cst_3 = arith.constant 3.200000e+01 : f32
    %11 = vector.broadcast %cst_3 : f32 to vector<16x1xf32>
    %12 = arith.divf %10, %11 : vector<16x1xf32>
    %13 = vector.broadcast %5 : vector<16x1xf32> to vector<16x32xf32>
    %14 = arith.subf %1, %13 : vector<16x32xf32>
    %cst_4 = arith.constant 9.99999974E-6 : f32
    %15 = vector.broadcast %cst_4 : f32 to vector<16x1xf32>
    %16 = arith.addf %12, %15 : vector<16x1xf32>
    %17 = math.rsqrt %16 : vector<16x1xf32>
    %18 = vector.broadcast %17 : vector<16x1xf32> to vector<16x32xf32>
    %19 = arith.mulf %14, %18 : vector<16x32xf32>
    %c0_5 = arith.constant 0 : index
    %c0_6 = arith.constant 0 : index
    %20 = vector.load %arg2[%c0_5, %c0_6] : memref<1x32xf32, #tpu.memory_space<vmem>>, vector<1x32xf32>
    %21 = vector.broadcast %20 : vector<1x32xf32> to vector<16x32xf32>
    %22 = arith.mulf %19, %21 : vector<16x32xf32>
    %c0_7 = arith.constant 0 : index
    %c0_8 = arith.constant 0 : index
    %23 = vector.load %arg3[%c0_7, %c0_8] : memref<1x32xf32, #tpu.memory_space<vmem>>, vector<1x32xf32>
    %24 = vector.broadcast %23 : vector<1x32xf32> to vector<16x32xf32>
    %25 = arith.addf %22, %24 : vector<16x32xf32>
    %26 = arith.truncf %25 : vector<16x32xf32> to vector<16x32xbf16>
    %c0_9 = arith.constant 0 : index
    %c0_10 = arith.constant 0 : index
    %27 = vector.load %arg4[%c0_9, %c0_10] : memref<16x32xbf16, #tpu.memory_space<vmem>>, vector<16x32xbf16>
    tpu.vector_store %arg4[%c0_9, %c0_10], %26 {strides = array<i32>} : memref<16x32xbf16, #tpu.memory_space<vmem>>, vector<16x32xbf16>,
    return
  }
  func.func @transform_0(%arg0: i32) -> (i32, i32) {
    %c0_i32 = arith.constant 0 : i32
    %c0_i32_0 = arith.constant 0 : i32
    return %arg0, %c0_i32 : i32, i32
  }
  func.func @transform_1(%arg0: i32) -> (i32, i32) {
    %c0_i32 = arith.constant 0 : i32
    %c0_i32_0 = arith.constant 0 : i32
    %c0_i32_1 = arith.constant 0 : i32
    return %c0_i32, %c0_i32_0 : i32, i32
  }
  func.func @transform_2(%arg0: i32) -> (i32, i32) {
    %c0_i32 = arith.constant 0 : i32
    %c0_i32_0 = arith.constant 0 : i32
    %c0_i32_1 = arith.constant 0 : i32
    return %c0_i32, %c0_i32_0 : i32, i32
  }
  func.func @transform_3(%arg0: i32) -> (i32, i32) {
    %c0_i32 = arith.constant 0 : i32
    %c0_i32_0 = arith.constant 0 : i32
    return %arg0, %c0_i32 : i32, i32
  }
}

</mosaic_0001>

<bundles_post_ra>
// kernel: tpu_custom_call.1
= control target key start
LH: loop header
LB: loop body
LE: loop exit
PB: predicated region body
PF: predicated region fallthrough
CT: control target
= control target key end

     0   :  { %8 = vsyncpa [#allocation3], 0  ;;  %s237_s0 = inlined_call_operand.hbm [shape: bf16[16,32], index: 0, kind: input, shape index: {}]   ;;  %s238_s1 = inlined_call_operand.vmem [shape: f32[1,32], index: 1, kind: input, shape index: {}]   ;;  %s239_s2 = inlined_call_operand.vmem [shape: f32[1,32], index: 2, kind: input, shape index: {}]   ;;  %s240_s3 = inlined_call_operand.hbm [shape: bf16[16,32], index: 3, kind: output, shape index: {}]  }
   0x1   :  { %9 = vsyncpa [#allocation4], 0  ;;  %s173_s12 = smov [#allocation2]   ;;  %s125_s16 = scalar_lea.hbm %s237_s0, 128 }
   0x2   :  { %s15_s13 = sshll.u32 %s173_s12, 4  ;;  %p126_p0 = scmp.ne.s32.totalorder %s237_s0, %s125_s16  ;;  %s16_s13 = int_to_ptr.vmem [resolvable:$true] %s15_s13 }
   0x3   :  { %p129_p1 = scmp.lt.u32.totalorder %s125_s16, %s237_s0 }
   0x5   :  { %p131_p2 = pnand %p129_p1, %p126_p0 }
   0x7   :  { %134 = shalt.err (!%p131_p2)
}
   0x8   :  { %s135_s21 = scalar_lea.vmem %s16_s13, 128  ;;  %p140_p4 = scmp.lt.s32.totalorder %s16_s13, %s16_s13 }
   0x9   :  { %p136_p3 = scmp.ne.s32.totalorder %s16_s13, %s135_s21  ;;  %p141_p5 = scmp.lt.s32.totalorder %s135_s21, %s135_s21 }
   0xb   :  { %p142_p6 = por %p141_p5, %p140_p4 }
   0xd   :  { %p143_p7 = pnand %p142_p6, %p136_p3 }
   0xf   :  { %146 = shalt.err (!%p143_p7)
}
  0x10   :  { %s174_s22 = smov 64   ;;  %s175_s23 = smov 4  }
  0x11   :  { %21 = dma.hbm_to_vmem [thread:$0]  %s237_s0, 128, %s16_s13, [#allocation3], %s174_s22, %s174_s22, %s175_s23  }
  0x12   :  { %169 = dma.done.wait [#allocation3], 128  }
  0x13   :  { %170 = vsyncadd [#allocation3], 4294967168  ;;  %v114_v0 = vld [vmem:[#allocation2] sm:$0xff]   ;;  %vm33_vm0 = vcmask 261120   ;;  %vm87_vm1 = vcmask 257024   ;;  %s176_s29 = smov [#allocation5]  }
  0x14   :  { %v115_v1 = vunpack.c.l.bf16 %v114_v0  ;;  %v116_v2 = vunpack.c.h.bf16 %v114_v0  ;;  %v107_v22 = vld [vmem:[%s238_s1] ss:$0 sm:$0xff]  ;;  %s95_s30 = sshll.u32 %s176_s29, 4  ;;  %s96_s30 = int_to_ptr.vmem [resolvable:$true] %s95_s30 }
  0x15   :  { %v108_v24 = vld [vmem:[%s239_s2] ss:$0 sm:$0xff]  ;;  %s147_s1 = scalar_lea.vmem %s96_s30, 128  ;;  %p152_p9 = scmp.lt.s32.totalorder %s96_s30, %s96_s30 }
  0x16   :  { %v34_v3 = vsel %vm33_vm0, %v115_v1, 0.0  ;;  %v37_v4 = vsel %vm33_vm0, %v116_v2, 0.0  ;;  %p148_p8 = scmp.ne.s32.totalorder %s96_s30, %s147_s1  ;;  %p153_p10 = scmp.lt.s32.totalorder %s147_s1, %s147_s1 }
  0x17   :  { %35 = vadd.xlane.f32.xlu0 %v34_v3 }
  0x18   :  { %p154_p11 = por %p153_p10, %p152_p9 }
  0x1a   :  { %p155_p12 = pnand %p154_p11, %p148_p8 }
  0x1b   :  { %38 = vadd.xlane.f32.xlu0 %v37_v4 }
  0xa4   :  { %v36_v5 = vpop.xlane.xlu0 %35 }
  0xa5   :  { %v41_v6 = vmul.f32 0.03125, %v36_v5 }
  0xa7   :  { %v43_v7 = vsub.f32 %v115_v1, %v41_v6 }
  0xa8   :  { %v39_v8 = vpop.xlane.xlu0 %38 }
  0xa9   :  { %v42_v9 = vmul.f32 0.03125, %v39_v8  ;;  %v45_v10 = vmul.f32 %v43_v7, %v43_v7 }
  0xab   :  { %v44_v11 = vsub.f32 %v116_v2, %v42_v9  ;;  %v47_v12 = vsel %vm33_vm0, %v45_v10, 0.0 }
  0xac   :  { %48 = vadd.xlane.f32.xlu1 %v47_v12 }
  0xad   :  { %v46_v13 = vmul.f32 %v44_v11, %v44_v11 }
  0xaf   :  { %v50_v14 = vsel %vm33_vm0, %v46_v13, 0.0 }
  0xb0   :  { %51 = vadd.xlane.f32.xlu1 %v50_v14 }
 0x139   :  { %v49_v15 = vpop.xlane.xlu1 %48 }
 0x13a   :  { %v53_v16 = vmul.f32 0.03125, %v49_v15 }
 0x13c   :  { %v55_v17 = vadd.f32 1e-05, %v53_v16 }
 0x13d   :  { %v52_v18 = vpop.xlane.xlu1 %51 }
 0x13e   :  { %121 = vrsqrt.f32 %v55_v17  ;;  %v54_v19 = vmul.f32 0.03125, %v52_v18 }
 0x140   :  { %v56_v20 = vadd.f32 1e-05, %v54_v19 }
 0x142   :  { %123 = vrsqrt.f32 %v56_v20 }
 0x148   :  { %v122_v21 = vpop.eup %121 }
 0x149   :  { %v59_v23 = vmul.f32 %v122_v21, %v43_v7 }
 0x14b   :  { %v68_v25 = vmul.f32 %v107_v22, %v59_v23 }
 0x14c   :  { %v124_v26 = vpop.eup %123 }
 0x14d   :  { %v60_v27 = vmul.f32 %v124_v26, %v44_v11  ;;  %v77_v28 = vadd.f32 %v108_v24, %v68_v25 }
 0x14f   :  { %v69_v29 = vmul.f32 %v107_v22, %v60_v27  ;;  %v111_v30 = vpack.c.bf16 %v77_v28, %v77_v28 }
 0x151   :  { %v78_v31 = vadd.f32 %v108_v24, %v69_v29  ;;  %88 = vst.msk [vmem:[#allocation5] sm:$0xf] %vm87_vm1, %v111_v30 }
 0x153   :  { %v112_v32 = vpack.c.bf16 %v78_v31, %v78_v31 }
 0x155   :  { %89 = vst.msk [vmem:[#allocation5 + $0x4] sm:$0xf] %vm87_vm1, %v112_v32 }
 0x156   :  { %158 = shalt.err (!%p155_p12)
}
 0x157   :  { %s159_s5 = scalar_lea.hbm %s240_s3, 128 }
 0x158   :  { %p160_p13 = scmp.ne.s32.totalorder %s240_s3, %s159_s5  ;;  %p163_p0 = scmp.lt.u32.totalorder %s159_s5, %s240_s3 }
 0x15a   :  { %p165_p1 = pnand %p163_p0, %p160_p13 }
 0x15c   :  { %168 = shalt.err (!%p165_p1)
}
 0x15d   :  { %101 = dma.vmem_to_hbm [thread:$0]  %s96_s30, 128, %s240_s3, [#allocation4], %s174_s22, %s174_s22, %s175_s23  }
 0x15e   :  { %171 = dma.done.wait [#allocation4], 128  }
 0x15f   :  { %172 = vsyncadd [#allocation4], 4294967168 }
 0x160   :  { %105 = vsyncpa [#allocation3], 1 }
 0x161   :  { %106 = vsyncpa [#allocation4], 1 }

</bundles_post_ra>
